<compile_context>
chip_gen: v5e
topology: v5e:2x2
jax: 0.10.0
libtpu: 0.0.40
codegen_flags: <defaults>
</compile_context>

<pallas_src>
import jax
import jax.numpy as jnp
from jax.experimental import pallas as pl
from jax.experimental.pallas import tpu as pltpu

LANE = 128
BATCH_ALIGN = 16  # bf16 output packs 16 sublanes per vreg


def _round_up(n, m):
    return ((n + m - 1) // m) * m


def dqn_kernel(x_ref, w1_ref, b1_ref, w2_ref, b2_ref, w3_ref, b3_ref, o_ref):
    # fc1 + ReLU: cast x to bf16 in-kernel (no wrapper pad/cast HBM pass),
    # MXU matmul with f32 accumulation, bias/ReLU in f32 on the VPU.
    x = x_ref[...].astype(jnp.bfloat16)
    h1 = jnp.dot(x, w1_ref[...], preferred_element_type=jnp.float32)
    h1 = jnp.maximum(h1 + b1_ref[...], 0.0)
    # fc2 + ReLU
    h2 = jnp.dot(h1.astype(jnp.bfloat16), w2_ref[...],
                 preferred_element_type=jnp.float32)
    h2 = jnp.maximum(h2 + b2_ref[...], 0.0)
    # fc3 (no activation); lane-dense bf16 store halves writeback bytes.
    out = jnp.dot(h2.astype(jnp.bfloat16), w3_ref[...],
                  preferred_element_type=jnp.float32)
    o_ref[...] = (out + b3_ref[...]).astype(o_ref.dtype)


def init_params(key, state_size, action_size, hidden_size):
    """Deterministic init mimicking nn.Linear's uniform(-1/sqrt(fan_in), +).
    Weights are stored as (in_features, out_features) = PyTorch weight.T,
    so the kernel computes y = x @ W + b directly."""
    ks = jax.random.split(key, 6)

    def lin(kw, kb, fan_in, fan_out):
        bound = 1.0 / jnp.sqrt(fan_in)
        w = jax.random.uniform(kw, (fan_in, fan_out), jnp.float32, -bound, bound)
        b = jax.random.uniform(kb, (1, fan_out), jnp.float32, -bound, bound)
        return w, b

    w1, b1 = lin(ks[0], ks[1], state_size, hidden_size)
    w2, b2 = lin(ks[2], ks[3], hidden_size, hidden_size)
    w3, b3 = lin(ks[4], ks[5], hidden_size, action_size)
    return {"w1": w1, "b1": b1, "w2": w2, "b2": b2, "w3": w3, "b3": b3}


def prepare_params(params):
    """One-time prep: pad hidden/action dims up to 128 lanes and cast weights
    to bf16 (biases stay f32).  The state (input) dim of w1 is NOT padded, so
    x needs no wrapper-side lane padding.  Padded bias lanes are zero so
    padding never leaks through ReLU into later layers."""
    def pad2(a, rows, cols, dtype):
        out = jnp.zeros((rows, cols), dtype)
        return out.at[: a.shape[0], : a.shape[1]].set(a.astype(dtype))

    w1, b1 = params["w1"], params["b1"]
    w2, b2 = params["w2"], params["b2"]
    w3, b3 = params["w3"], params["b3"]
    s, h = w1.shape
    a = w3.shape[1]
    hp, ap = _round_up(h, LANE), _round_up(a, LANE)
    return {
        "w1": pad2(w1, s, hp, jnp.bfloat16),   # state dim left un-padded
        "b1": pad2(b1, 1, hp, jnp.float32),
        "w2": pad2(w2, hp, hp, jnp.bfloat16),
        "b2": pad2(b2, 1, hp, jnp.float32),
        "w3": pad2(w3, hp, ap, jnp.bfloat16),
        "b3": pad2(b3, 1, ap, jnp.float32),
    }


def dqn_forward(x, pparams, action_size, max_tile_b=2048):
    """x: (B, state_size) float32.  pparams: output of prepare_params."""
    B, S = x.shape
    assert pparams["w1"].shape[0] == S, "state_size mismatch with prepared params"
    Hp = pparams["w1"].shape[1]   # padded hidden dim
    Ap = pparams["w3"].shape[1]   # padded action dim

    # Batch tiling: large tiles to amortize per-step overhead, but aim for at
    # least 2 grid steps for big batches so both v7x TensorCores get work.
    b_aligned = _round_up(B, BATCH_ALIGN)
    tile_b = max(BATCH_ALIGN,
                 min(max_tile_b, _round_up(pl.cdiv(b_aligned, 2), BATCH_ALIGN)))
    Bp = _round_up(b_aligned, tile_b)

    # Only pad batch rows (f32, no dtype cast, no lane padding).
    xp = x if Bp == B else jnp.zeros((Bp, S), x.dtype).at[:B].set(x)

    # Weights/biases: constant index_map -> VMEM-resident across grid steps.
    resident = lambda arr: pl.BlockSpec(arr.shape, lambda i: (0,) * arr.ndim)

    # Advisory cost + explicit VMEM budget (lane-padded VMEM footprints,
    # double-buffered streams, f32 h1/h2 temporaries, headroom).
    w_bytes = (S * Hp + Hp * Hp + Hp * Ap) * 2 + 3 * Hp * 4
    cost = pl.CostEstimate(
        flops=2 * Bp * (S * Hp + Hp * Hp + Hp * Ap),
        transcendentals=0,
        bytes_accessed=Bp * S * 4 + Bp * Ap * 2 + w_bytes,
    )
    s_vmem = _round_up(S, LANE)
    vmem_bytes = (2 * tile_b * s_vmem * 4      # x tiles (f32), double-buffered
                  + 2 * tile_b * Ap * 2        # out tiles (bf16), double-buffered
                  + 2 * w_bytes                # resident weights/biases (x2 safety)
                  + 2 * tile_b * Hp * 4        # f32 h1/h2 temporaries
                  + (6 << 20))                 # compiler scratch headroom
    vmem_limit = int(min(vmem_bytes, 32 << 20))  # safe on v5e/v6e/v7x per-TC

    out = pl.pallas_call(
        dqn_kernel,
        out_shape=jax.ShapeDtypeStruct((Bp, Ap), jnp.bfloat16),
        grid_spec=pl.GridSpec(
            grid=(Bp // tile_b,),
            in_specs=[
                pl.BlockSpec((tile_b, S), lambda i: (i, 0)),
                resident(pparams["w1"]), resident(pparams["b1"]),
                resident(pparams["w2"]), resident(pparams["b2"]),
                resident(pparams["w3"]), resident(pparams["b3"]),
            ],
            out_specs=pl.BlockSpec((tile_b, Ap), lambda i: (i, 0)),
        ),
        compiler_params=pltpu.CompilerParams(
            dimension_semantics=("parallel",),   # shard batch across v7x TCs
            vmem_limit_bytes=vmem_limit),
        cost_estimate=cost,
    )(xp, pparams["w1"], pparams["b1"], pparams["w2"], pparams["b2"],
      pparams["w3"], pparams["b3"])

    return out[:B, :action_size].astype(jnp.float32)


def ref_forward(x, params):
    """Pure-JAX reference matching the kernel's precision path
    (bf16 matmul inputs, f32 accumulate, f32 bias/ReLU, bf16 output)."""
    f = lambda a: a.astype(jnp.bfloat16).astype(jnp.float32)
    h = jnp.maximum(f(x) @ f(params["w1"]) + params["b1"], 0.0)
    h = jnp.maximum(f(h) @ f(params["w2"]) + params["b2"], 0.0)
    out = f(h) @ f(params["w3"]) + params["b3"]
    return out.astype(jnp.bfloat16).astype(jnp.float32)


if __name__ == "__main__":
    key = jax.random.PRNGKey(0)
    k_params, k_x = jax.random.split(key)

    batch, state_size, action_size, hidden_size = 2, 8, 4, 32
    params = init_params(k_params, state_size, action_size, hidden_size)
    pparams = prepare_params(params)
    x = jax.random.normal(k_x, (batch, state_size), jnp.float32)

    out = dqn_forward(x, pparams, action_size)
    jax.block_until_ready(out)

    ref = ref_forward(x, params)
    assert out.shape == (batch, action_size)
    assert jnp.allclose(out, ref, atol=2e-2, rtol=2e-2), "mismatch vs reference"

    print("KERNEL_OK")
</pallas_src>

<mosaic_0001>
module attributes {stable_mosaic.version = 11 : i64} {
  func.func @dqn_kernel(%arg0: i32, %arg1: memref<16x8xf32, #tpu.memory_space<vmem>>, %arg2: memref<8x128xbf16, #tpu.memory_space<vmem>>, %arg3: memref<1x128xf32, #tpu.memory_space<vmem>>, %arg4: memref<128x128xbf16, #tpu.memory_space<vmem>>, %arg5: memref<1x128xf32, #tpu.memory_space<vmem>>, %arg6: memref<128x128xbf16, #tpu.memory_space<vmem>>, %arg7: memref<1x128xf32, #tpu.memory_space<vmem>>, %arg8: memref<16x128xbf16, #tpu.memory_space<vmem>>) attributes {dimension_semantics = [#tpu.dimension_semantics<parallel>], iteration_bounds = array<i64: 1>, scalar_prefetch = 0 : i64, scratch_operands = 0 : i64, tpu.core_type = #tpu.core_type<tc>, window_params = [{transform_indices = @transform_0, window_bounds = array<i64: 16, 8>}, {pipeline_mode = #tpu.pipeline_mode<synchronous>, transform_indices = @transform_1, window_bounds = array<i64: 8, 128>}, {pipeline_mode = #tpu.pipeline_mode<synchronous>, transform_indices = @transform_2, window_bounds = array<i64: 1, 128>}, {pipeline_mode = #tpu.pipeline_mode<synchronous>, transform_indices = @transform_3, window_bounds = array<i64: 128, 128>}, {pipeline_mode = #tpu.pipeline_mode<synchronous>, transform_indices = @transform_4, window_bounds = array<i64: 1, 128>}, {pipeline_mode = #tpu.pipeline_mode<synchronous>, transform_indices = @transform_5, window_bounds = array<i64: 128, 128>}, {pipeline_mode = #tpu.pipeline_mode<synchronous>, transform_indices = @transform_6, window_bounds = array<i64: 1, 128>}, {transform_indices = @transform_7, window_bounds = array<i64: 16, 128>}]} {
    %c0 = arith.constant 0 : index
    %c0_0 = arith.constant 0 : index
    %0 = vector.load %arg1[%c0, %c0_0] : memref<16x8xf32, #tpu.memory_space<vmem>>, vector<16x8xf32>
    %1 = arith.truncf %0 : vector<16x8xf32> to vector<16x8xbf16>
    %c0_1 = arith.constant 0 : index
    %c0_2 = arith.constant 0 : index
    %2 = vector.load %arg2[%c0_1, %c0_2] : memref<8x128xbf16, #tpu.memory_space<vmem>>, vector<8x128xbf16>
    %cst = arith.constant dense<0.000000e+00> : vector<16x128xf32>
    %3 = tpu.matmul %1, %2, %cst {dimension_numbers = #tpu.dot_dimension_numbers<[1], [0], [0], [1], [0, 0, 1, 1], [], []>} : vector<16x8xbf16>, vector<8x128xbf16>, vector<16x128xf32> -> vector<16x128xf32>
    %c0_3 = arith.constant 0 : index
    %c0_4 = arith.constant 0 : index
    %4 = vector.load %arg3[%c0_3, %c0_4] : memref<1x128xf32, #tpu.memory_space<vmem>>, vector<1x128xf32>
    %5 = vector.broadcast %4 : vector<1x128xf32> to vector<16x128xf32>
    %6 = arith.addf %3, %5 : vector<16x128xf32>
    %cst_5 = arith.constant 0.000000e+00 : f32
    %7 = vector.broadcast %cst_5 : f32 to vector<16x128xf32>
    %8 = arith.maximumf %6, %7 : vector<16x128xf32>
    %9 = arith.truncf %8 : vector<16x128xf32> to vector<16x128xbf16>
    %c0_6 = arith.constant 0 : index
    %c0_7 = arith.constant 0 : index
    %10 = vector.load %arg4[%c0_6, %c0_7] : memref<128x128xbf16, #tpu.memory_space<vmem>>, vector<128x128xbf16>
    %cst_8 = arith.constant dense<0.000000e+00> : vector<16x128xf32>
    %11 = tpu.matmul %9, %10, %cst_8 {dimension_numbers = #tpu.dot_dimension_numbers<[1], [0], [0], [1], [0, 0, 1, 1], [], []>} : vector<16x128xbf16>, vector<128x128xbf16>, vector<16x128xf32> -> vector<16x128xf32>
    %c0_9 = arith.constant 0 : index
    %c0_10 = arith.constant 0 : index
    %12 = vector.load %arg5[%c0_9, %c0_10] : memref<1x128xf32, #tpu.memory_space<vmem>>, vector<1x128xf32>
    %13 = vector.broadcast %12 : vector<1x128xf32> to vector<16x128xf32>
    %14 = arith.addf %11, %13 : vector<16x128xf32>
    %cst_11 = arith.constant 0.000000e+00 : f32
    %15 = vector.broadcast %cst_11 : f32 to vector<16x128xf32>
    %16 = arith.maximumf %14, %15 : vector<16x128xf32>
    %17 = arith.truncf %16 : vector<16x128xf32> to vector<16x128xbf16>
    %c0_12 = arith.constant 0 : index
    %c0_13 = arith.constant 0 : index
    %18 = vector.load %arg6[%c0_12, %c0_13] : memref<128x128xbf16, #tpu.memory_space<vmem>>, vector<128x128xbf16>
    %cst_14 = arith.constant dense<0.000000e+00> : vector<16x128xf32>
    %19 = tpu.matmul %17, %18, %cst_14 {dimension_numbers = #tpu.dot_dimension_numbers<[1], [0], [0], [1], [0, 0, 1, 1], [], []>} : vector<16x128xbf16>, vector<128x128xbf16>, vector<16x128xf32> -> vector<16x128xf32>
    %c0_15 = arith.constant 0 : index
    %c0_16 = arith.constant 0 : index
    %20 = vector.load %arg7[%c0_15, %c0_16] : memref<1x128xf32, #tpu.memory_space<vmem>>, vector<1x128xf32>
    %21 = vector.broadcast %20 : vector<1x128xf32> to vector<16x128xf32>
    %22 = arith.addf %19, %21 : vector<16x128xf32>
    %23 = arith.truncf %22 : vector<16x128xf32> to vector<16x128xbf16>
    %c0_17 = arith.constant 0 : index
    %c0_18 = arith.constant 0 : index
    %24 = vector.load %arg8[%c0_17, %c0_18] : memref<16x128xbf16, #tpu.memory_space<vmem>>, vector<16x128xbf16>
    tpu.vector_store %arg8[%c0_17, %c0_18], %23 {strides = array<i32>} : memref<16x128xbf16, #tpu.memory_space<vmem>>, vector<16x128xbf16>,
    return
  }
  func.func @transform_0(%arg0: i32) -> (i32, i32) {
    %c0_i32 = arith.constant 0 : i32
    %c0_i32_0 = arith.constant 0 : i32
    return %arg0, %c0_i32 : i32, i32
  }
  func.func @transform_1(%arg0: i32) -> (i32, i32) {
    %c0_i32 = arith.constant 0 : i32
    %c0_i32_0 = arith.constant 0 : i32
    %c0_i32_1 = arith.constant 0 : i32
    return %c0_i32, %c0_i32_0 : i32, i32
  }
  func.func @transform_2(%arg0: i32) -> (i32, i32) {
    %c0_i32 = arith.constant 0 : i32
    %c0_i32_0 = arith.constant 0 : i32
    %c0_i32_1 = arith.constant 0 : i32
    return %c0_i32, %c0_i32_0 : i32, i32
  }
  func.func @transform_3(%arg0: i32) -> (i32, i32) {
    %c0_i32 = arith.constant 0 : i32
    %c0_i32_0 = arith.constant 0 : i32
    %c0_i32_1 = arith.constant 0 : i32
    return %c0_i32, %c0_i32_0 : i32, i32
  }
  func.func @transform_4(%arg0: i32) -> (i32, i32) {
    %c0_i32 = arith.constant 0 : i32
    %c0_i32_0 = arith.constant 0 : i32
    %c0_i32_1 = arith.constant 0 : i32
    return %c0_i32, %c0_i32_0 : i32, i32
  }
  func.func @transform_5(%arg0: i32) -> (i32, i32) {
    %c0_i32 = arith.constant 0 : i32
    %c0_i32_0 = arith.constant 0 : i32
    %c0_i32_1 = arith.constant 0 : i32
    return %c0_i32, %c0_i32_0 : i32, i32
  }
  func.func @transform_6(%arg0: i32) -> (i32, i32) {
    %c0_i32 = arith.constant 0 : i32
    %c0_i32_0 = arith.constant 0 : i32
    %c0_i32_1 = arith.constant 0 : i32
    return %c0_i32, %c0_i32_0 : i32, i32
  }
  func.func @transform_7(%arg0: i32) -> (i32, i32) {
    %c0_i32 = arith.constant 0 : i32
    %c0_i32_0 = arith.constant 0 : i32
    return %arg0, %c0_i32 : i32, i32
  }
}

</mosaic_0001>

<bundles_post_ra>
// kernel: tpu_custom_call.1
= control target key start
LH: loop header
LB: loop body
LE: loop exit
PB: predicated region body
PF: predicated region fallthrough
CT: control target
= control target key end

     0   :  { %12 = vsyncpa [#allocation3], 0  ;;  %s537_s0 = inlined_call_operand.vmem [shape: f32[16,8], index: 0, kind: input, shape index: {}]   ;;  %s538_s1 = inlined_call_operand.vmem [shape: bf16[8,128], index: 1, kind: input, shape index: {}]   ;;  %s539_s2 = inlined_call_operand.vmem [shape: f32[1,128], index: 2, kind: input, shape index: {}]   ;;  %s540_s3 = inlined_call_operand.hbm [shape: bf16[128,128], index: 3, kind: input, shape index: {}]   ;;  %s541_s4 = inlined_call_operand.vmem [shape: f32[1,128], index: 4, kind: input, shape index: {}]   ;;  %s542_s5 = inlined_call_operand.hbm [shape: bf16[128,128], index: 5, kind: input, shape index: {}]   ;;  %s543_s6 = inlined_call_operand.vmem [shape: f32[1,128], index: 6, kind: input, shape index: {}]   ;;  %s544_s7 = inlined_call_operand.hbm [shape: bf16[16,128], index: 7, kind: output, shape index: {}]  }
   0x1   :  { %13 = vsyncpa [#allocation6], 0 }
   0x2   :  { %14 = vsyncpa [#allocation4], 0  ;;  %s25_s26 = sshll.u32 %s540_s3, 4  ;;  %s456_s27 = smov [#allocation2]   ;;  %s26_s26 = int_to_ptr.hbm [resolvable:$true] %s25_s26 }
   0x3   :  { %s27_s28 = sshll.u32 %s456_s27, 4  ;;  %s40_s8 = sshll.u32 %s542_s5, 4  ;;  %s28_s28 = int_to_ptr.vmem [resolvable:$true] %s27_s28  ;;  %s41_s8 = int_to_ptr.hbm [resolvable:$true] %s40_s8 }
   0x4   :  { %s457_s9 = smov 64   ;;  %s458_s10 = smov 4  }
   0x5   :  { %33 = dma.hbm_to_vmem [thread:$0]  %s26_s26, 1024, %s28_s28, [#allocation3], %s457_s9, %s457_s9, %s458_s10  }
   0x6   :  { %s459_s11 = smov [#allocation5]  }
   0x7   :  { %s42_s12 = sshll.u32 %s459_s11, 4  ;;  %s43_s12 = int_to_ptr.vmem [resolvable:$true] %s42_s12 }
   0x8   :  { %48 = dma.hbm_to_vmem [thread:$0]  %s41_s8, 1024, %s43_s12, [#allocation6], %s457_s9, %s457_s9, %s458_s10  }
   0x9   :  { %450 = dma.done.wait [#allocation3], 1024  }
   0xa   :  { %451 = vsyncadd [#allocation3], 4294966272 }
   0xb   :  { %452 = dma.done.wait [#allocation6], 1024  }
   0xc   :  { %453 = vsyncadd [#allocation6], 4294966272  ;;  %vm72_vm0 = vcmask 1043456   ;;  %v63_v0 = vld [vmem:[%s538_s1] sm:$0xf]  ;;  %v61_v2 = vld [vmem:[%s537_s0 + $0x8] sm:$0xff] }
   0xd   :  { %v60_v1 = vld [vmem:[%s537_s0] sm:$0xff]  ;;  %v74_v3 = vsel %vm72_vm0, %v63_v0, 0  ;;  %v356_v5 = vld [vmem:[#allocation2 + $0x38] sm:$0xff]  ;;  %vm68_vm1 = vcmask 64512   ;;  %v355_v6 = vld [vmem:[#allocation2 + $0x30] sm:$0xff]  ;;  %s460_s20 = smov [#allocation7]  }
   0xe   :  { %v62_v4 = vpack.c.bf16 %v61_v2, %v60_v1  ;;  %83 = vmatpush.bf16.msra.mxu0 %v74_v3  ;;  %161 = vmatpush.bf16.msra.mxu1 %v356_v5  ;;  %v354_v7 = vld [vmem:[#allocation2 + $0x28] sm:$0xff]  ;;  %v353_v8 = vld [vmem:[#allocation2 + $0x20] sm:$0xff]  ;;  %v352_v9 = vld [vmem:[#allocation2 + $0x18] sm:$0xff]  ;;  %s268_s21 = sshll.u32 %s460_s20, 4  ;;  %s270_s24 = sshll.u32 %s544_s7, 4  ;;  %s269_s21 = int_to_ptr.vmem [resolvable:$true] %s268_s21  ;;  %s271_s24 = int_to_ptr.hbm [resolvable:$true] %s270_s24 }
   0xf   :  { %v351_v10 = vld [vmem:[#allocation2 + $0x10] sm:$0xff]  ;;  %v350_v11 = vld [vmem:[#allocation2 + $0x8] sm:$0xff]  ;;  %v349_v12 = vld [vmem:[#allocation2] sm:$0xff] }
  0x10   :  { %v364_v13 = vld [vmem:[#allocation5 + $0x38] sm:$0xff]  ;;  %v363_v14 = vld [vmem:[#allocation5 + $0x30] sm:$0xff]  ;;  %v362_v15 = vld [vmem:[#allocation5 + $0x28] sm:$0xff] }
  0x11   :  { %284 = vmatmul.msk.bf16.vlgmr.msra.gmra.mxu0 %vm68_vm1, %v62_v4  ;;  %246 = vmatpush.bf16.msra.mxu2 %v364_v13  ;;  %v361_v16 = vld [vmem:[#allocation5 + $0x20] sm:$0xff]  ;;  %v360_v25 = vld [vmem:[#allocation5 + $0x18] sm:$0xff]  ;;  %v359_v26 = vld [vmem:[#allocation5 + $0x10] sm:$0xff] }
  0x12   :  { %162 = vmatpush.bf16.msra.mxu1 %v355_v6  ;;  %v375_v18 = vld [vmem:[%s539_s2] ss:$0 sm:$0xff]  ;;  %v358_v27 = vld [vmem:[#allocation5 + $0x8] sm:$0xff] }
  0x13   :  { %v357_v28 = vld [vmem:[#allocation5] sm:$0xff] }
  0x14   :  { %v376_v30 = vld [vmem:[%s541_s4] ss:$0 sm:$0xff] }
  0x15   :  { %247 = vmatpush.bf16.msra.mxu2 %v363_v14  ;;  %v377_v38 = vld [vmem:[%s543_s6] ss:$0 sm:$0xff] }
  0x16   :  { %163 = vmatpush.bf16.msra.mxu1 %v354_v7 }
  0x19   :  { %248 = vmatpush.bf16.msra.mxu2 %v362_v15 }
  0x1a   :  { %164 = vmatpush.bf16.msra.mxu1 %v353_v8 }
  0x1d   :  { %249 = vmatpush.bf16.msra.mxu2 %v361_v16 }
  0x1e   :  { %165 = vmatpush.bf16.msra.mxu1 %v352_v9 }
  0x21   :  { %250 = vmatpush.bf16.msra.mxu2 %v360_v25 }
  0x22   :  { %166 = vmatpush.bf16.msra.mxu1 %v351_v10 }
  0x25   :  { %251 = vmatpush.bf16.msra.mxu2 %v359_v26 }
  0x26   :  { %167 = vmatpush.bf16.msra.mxu1 %v350_v11 }
  0x29   :  { %252 = vmatpush.bf16.msra.mxu2 %v358_v27 }
  0x2a   :  { %168 = vmatpush.bf16.msra.mxu1 %v349_v12 }
  0x2d   :  { %253 = vmatpush.bf16.msra.mxu2 %v357_v28 }
  0x8e   :  { %v85_v17 = vpop.f32.mrf.mxu0 }
  0x8f   :  { %v86_v19 = vadd.f32 %v375_v18, %v85_v17 }
  0x91   :  { %v90_v22 = vmax.f32 %v86_v19, 0.0 }
  0x96   :  { %v87_v20 = vpop.f32.mrf.mxu0 }
  0x97   :  { %v88_v21 = vadd.f32 %v375_v18, %v87_v20 }
  0x99   :  { %v91_v23 = vmax.f32 %v88_v21, 0.0 }
  0x9b   :  { %v92_v24 = vpack.c.bf16 %v91_v23, %v90_v22 }
  0x9d   :  { %169 = vmatmul.bf16.vlgmr.msra.gmra.mxu1 %v92_v24 }
 0x11a   :  { %v170_v29 = vpop.f32.mrf.mxu1 }
 0x11b   :  { %v171_v31 = vadd.f32 %v376_v30, %v170_v29 }
 0x11d   :  { %v175_v34 = vmax.f32 %v171_v31, 0.0 }
 0x122   :  { %v172_v32 = vpop.f32.mrf.mxu1 }
 0x123   :  { %v173_v33 = vadd.f32 %v376_v30, %v172_v32 }
 0x125   :  { %v176_v35 = vmax.f32 %v173_v33, 0.0 }
 0x127   :  { %v177_v36 = vpack.c.bf16 %v176_v35, %v175_v34 }
 0x129   :  { %254 = vmatmul.bf16.vlgmr.msra.gmra.mxu2 %v177_v36 }
 0x1ac   :  { %v255_v37 = vpop.f32.mrf.mxu2 }
 0x1ad   :  { %v256_v40 = vadd.f32 %v377_v38, %v255_v37 }
 0x1b4   :  { %v257_v39 = vpop.f32.mrf.mxu2 }
 0x1b5   :  { %v258_v41 = vadd.f32 %v377_v38, %v257_v39 }
 0x1b7   :  { %v368_v42 = vpack.c.bf16 %v258_v41, %v256_v40 }
 0x1b9   :  { %369 = vst [vmem:[#allocation7] sm:$0xff] %v368_v42  }
 0x1ba   :  { %276 = dma.vmem_to_hbm [thread:$0]  %s269_s21, 128, %s271_s24, [#allocation4], %s457_s9, %s457_s9, %s458_s10  }
 0x1bb   :  { %454 = dma.done.wait [#allocation4], 128  }
 0x1bc   :  { %455 = vsyncadd [#allocation4], 4294967168 }
 0x1bd   :  { %281 = vsyncpa [#allocation3], 1 }
 0x1be   :  { %282 = vsyncpa [#allocation6], 1 }
 0x1bf   :  { %283 = vsyncpa [#allocation4], 1 }

</bundles_post_ra>
